<compile_context>
chip_gen: v6e
topology: v6e:2x2x1
jax: 0.10.0
libtpu: 0.0.40
codegen_flags: <defaults>
</compile_context>

<pallas_src>
import functools

import jax
import jax.numpy as jnp
from jax.experimental import pallas as pl
from jax.experimental.pallas import tpu as pltpu


HIDDEN = 256
NOISE_STEPS = 1000


# --------------------------------------------------------------------------
# Kernel
# --------------------------------------------------------------------------
def _mlp_kernel(xaug_ref, w1aug_ref, w2_ref, b2_ref, o_ref, *, bf16_epilogue):
    """Fused 2-layer MLP.  xaug = [x | t_norm | 1] already in bf16."""
    # Layer 1: single MXU dot; time column and b1 are folded into the
    # contraction (rows D and D+1 of w1aug), so there is no VPU epilogue
    # beyond ReLU.
    h = jnp.dot(xaug_ref[...], w1aug_ref[...],
                preferred_element_type=jnp.float32)          # (tb, H) f32

    if bf16_epilogue:
        # v6e / v7x: bf16-native VALU -> halve the elementwise work.
        h = jnp.maximum(h.astype(jnp.bfloat16), 0.0)         # (tb, H) bf16
    else:
        # v5-class: no bf16 VALU; ReLU in f32, then pack for the MXU.
        h = jnp.maximum(h, 0.0).astype(jnp.bfloat16)

    # Layer 2: MXU dot (bf16 in, f32 acc) + small (tb, D) bias add.
    out = jnp.dot(h, w2_ref[...], preferred_element_type=jnp.float32)
    o_ref[...] = (out + b2_ref[...]).astype(o_ref.dtype)


# --------------------------------------------------------------------------
# Wrapper
# --------------------------------------------------------------------------
def _device_kind():
    try:
        return jax.devices()[0].device_kind.lower()
    except Exception:  # pragma: no cover - defensive
        return ""


def _has_bf16_vpu():
    # v6e / v7x have a bf16-native VALU; v2-v5 do not.
    kind = _device_kind()
    return not any(tag in kind for tag in ("v2", "v3", "v4", "v5"))


def _chip_tensorcores():
    # v7x (2 TCs/chip) and v4/v5p megacore benefit from splitting a
    # single-tile batch across cores; v5e / v6e are 1 TC -> never split.
    kind = _device_kind()
    return 2 if any(tag in kind for tag in ("v7", "7x", "v4", "v5p")) else 1


def _pick_batch_tile(B, tb, num_cores):
    tb = max(8, min(int(tb), 4096))       # cap per review (v7x VMEM guard)
    tb = min(tb, B)
    # Split only when there is >1 TensorCore to feed and the whole batch
    # would otherwise land in a single grid step.
    if num_cores > 1 and tb >= B and B >= 16:
        tb = B // num_cores
    if tb < B:
        tb = max(8, (tb // 8) * 8)         # sublane-aligned when tiling
    return tb


def diffusion_forward(x, t, params, *, noise_steps=NOISE_STEPS, tb=2048,
                      bf16_epilogue=None):
    """x: (B, input_dim) f32, t: (B,) int. Returns (B, input_dim) f32."""
    w1, b1, w2, b2 = params["w1"], params["b1"], params["w2"], params["b2"]
    B, D = x.shape
    H = w1.shape[1]
    K = D + 2                                        # x | t_norm | ones

    if bf16_epilogue is None:
        bf16_epilogue = _has_bf16_vpu()

    # Augmented LHS: [x | t_norm | 1], cast once to bf16 (this is the same
    # concat the PyTorch module performs, plus the ones column for b1).
    t_norm = (t.astype(jnp.float32) / float(noise_steps)).reshape(B, 1)
    ones = jnp.ones_like(t_norm)
    x_aug = jnp.concatenate([x, t_norm, ones], axis=1).astype(jnp.bfloat16)

    # Augmented RHS: [W1 ; b1] (rows 0..D-1 = x block, row D = time column,
    # row D+1 = bias).  Tiny; VMEM-resident across the whole grid.
    w1_aug = jnp.concatenate([w1, b1.reshape(1, H)], axis=0).astype(jnp.bfloat16)
    w2b = w2.astype(jnp.bfloat16)                    # (H, D)
    b2_2d = b2.reshape(1, D)                         # f32

    tb = _pick_batch_tile(B, tb, _chip_tensorcores())
    grid = (pl.cdiv(B, tb),)

    kernel = functools.partial(_mlp_kernel, bf16_epilogue=bool(bf16_epilogue))

    return pl.pallas_call(
        kernel,
        out_shape=jax.ShapeDtypeStruct((B, D), jnp.float32),
        grid_spec=pltpu.PrefetchScalarGridSpec(
            num_scalar_prefetch=0,
            grid=grid,
            in_specs=[
                pl.BlockSpec((tb, K), lambda i: (i, 0)),   # [x|t|1] tile
                pl.BlockSpec((K, H), lambda i: (0, 0)),    # [W1;b1]  (resident)
                pl.BlockSpec((H, D), lambda i: (0, 0)),    # W2       (resident)
                pl.BlockSpec((1, D), lambda i: (0, 0)),    # b2
            ],
            out_specs=pl.BlockSpec((tb, D), lambda i: (i, 0)),
        ),
        compiler_params=pltpu.CompilerParams(
            dimension_semantics=("parallel",),
        ),
    )(x_aug, w1_aug, w2b, b2_2d)


# --------------------------------------------------------------------------
# Params + references
# --------------------------------------------------------------------------
def init_params(key, input_dim, hidden=HIDDEN):
    """PyTorch-Linear-style init: U(-1/sqrt(fan_in), 1/sqrt(fan_in))."""
    k1, k2, k3, k4 = jax.random.split(key, 4)
    fan1 = input_dim + 1
    fan2 = hidden
    bound1 = 1.0 / jnp.sqrt(fan1)
    bound2 = 1.0 / jnp.sqrt(fan2)
    return {
        # stored as (in_features, out_features)
        "w1": jax.random.uniform(k1, (fan1, hidden), jnp.float32, -bound1, bound1),
        "b1": jax.random.uniform(k2, (hidden,), jnp.float32, -bound1, bound1),
        "w2": jax.random.uniform(k3, (hidden, input_dim), jnp.float32, -bound2, bound2),
        "b2": jax.random.uniform(k4, (input_dim,), jnp.float32, -bound2, bound2),
    }


def _reference_forward_bf16(x, t, params, noise_steps=NOISE_STEPS):
    """Mirrors the kernel's numerics (bf16 MXU operands, folded b1, f32 acc)."""
    B, D = x.shape
    H = params["w1"].shape[1]
    t_norm = (t.astype(jnp.float32) / float(noise_steps)).reshape(B, 1)
    ones = jnp.ones_like(t_norm)
    x_aug = jnp.concatenate([x, t_norm, ones], axis=1).astype(jnp.bfloat16)
    w1_aug = jnp.concatenate([params["w1"], params["b1"].reshape(1, H)],
                             axis=0).astype(jnp.bfloat16)
    h = jnp.dot(x_aug, w1_aug, preferred_element_type=jnp.float32)
    h = jnp.maximum(h, 0.0).astype(jnp.bfloat16)
    out = jnp.dot(h, params["w2"].astype(jnp.bfloat16),
                  preferred_element_type=jnp.float32)
    return out + params["b2"]


def _reference_forward_f32(x, t, params, noise_steps=NOISE_STEPS):
    """Original full-f32 math (matches the PyTorch module)."""
    t_norm = t.astype(jnp.float32) / float(noise_steps)
    x_in = jnp.concatenate([x, t_norm[:, None]], axis=1)
    h = jnp.maximum(x_in @ params["w1"] + params["b1"], 0.0)
    return h @ params["w2"] + params["b2"]


# --------------------------------------------------------------------------
# Self-test
# --------------------------------------------------------------------------
if __name__ == "__main__":
    key = jax.random.PRNGKey(0)
    kx, kt, kp = jax.random.split(key, 3)

    input_dim = 32
    params = init_params(kp, input_dim)

    # (batch, tb): batch=8 -> single-tile grid; batch=40 with tb=16 -> 3-step
    # grid with a ragged (masked) last block, exercising the tiling path on
    # every chip generation; batch=40 default tb -> large-tile path.
    cases = [(8, None), (40, None), (40, 16)]
    for batch, tile in cases:
        kxb, ktb = jax.random.split(jax.random.fold_in(kx, batch))
        x = jax.random.normal(kxb, (batch, input_dim), jnp.float32)
        t = jax.random.randint(ktb, (batch,), 0, NOISE_STEPS, jnp.int32)

        kwargs = {} if tile is None else {"tb": tile}
        out = jax.block_until_ready(diffusion_forward(x, t, params, **kwargs))
        assert out.shape == (batch, input_dim)

        ref_bf16 = _reference_forward_bf16(x, t, params)
        ref_f32 = _reference_forward_f32(x, t, params)
        assert jnp.allclose(out, ref_bf16, atol=2e-3, rtol=2e-3), \
            "bf16-mirrored reference mismatch"
        assert jnp.allclose(out, ref_f32, atol=3e-2, rtol=3e-2), \
            "f32 reference mismatch"

    print("KERNEL_OK")
</pallas_src>

<mosaic_0001>
module attributes {stable_mosaic.version = 11 : i64} {
  func.func @_mlp_kernel(%arg0: i32, %arg1: memref<8x34xbf16, #tpu.memory_space<vmem>>, %arg2: memref<34x256xbf16, #tpu.memory_space<vmem>>, %arg3: memref<256x32xbf16, #tpu.memory_space<vmem>>, %arg4: memref<1x32xf32, #tpu.memory_space<vmem>>, %arg5: memref<8x32xf32, #tpu.memory_space<vmem>>) attributes {dimension_semantics = [#tpu.dimension_semantics<parallel>], iteration_bounds = array<i64: 1>, scalar_prefetch = 0 : i64, scratch_operands = 0 : i64, tpu.core_type = #tpu.core_type<tc>, window_params = [{transform_indices = @transform_0, window_bounds = array<i64: 8, 34>}, {pipeline_mode = #tpu.pipeline_mode<synchronous>, transform_indices = @transform_1, window_bounds = array<i64: 34, 256>}, {pipeline_mode = #tpu.pipeline_mode<synchronous>, transform_indices = @transform_2, window_bounds = array<i64: 256, 32>}, {pipeline_mode = #tpu.pipeline_mode<synchronous>, transform_indices = @transform_3, window_bounds = array<i64: 1, 32>}, {transform_indices = @transform_4, window_bounds = array<i64: 8, 32>}]} {
    %c0 = arith.constant 0 : index
    %c0_0 = arith.constant 0 : index
    %0 = vector.load %arg1[%c0, %c0_0] : memref<8x34xbf16, #tpu.memory_space<vmem>>, vector<8x34xbf16>
    %c0_1 = arith.constant 0 : index
    %c0_2 = arith.constant 0 : index
    %1 = vector.load %arg2[%c0_1, %c0_2] : memref<34x256xbf16, #tpu.memory_space<vmem>>, vector<34x256xbf16>
    %cst = arith.constant dense<0.000000e+00> : vector<8x256xf32>
    %2 = tpu.matmul %0, %1, %cst {dimension_numbers = #tpu.dot_dimension_numbers<[1], [0], [0], [1], [0, 0, 1, 1], [], []>} : vector<8x34xbf16>, vector<34x256xbf16>, vector<8x256xf32> -> vector<8x256xf32>
    %3 = arith.truncf %2 : vector<8x256xf32> to vector<8x256xbf16>
    %cst_3 = arith.constant 0.000000e+00 : bf16
    %4 = vector.broadcast %cst_3 : bf16 to vector<8x256xbf16>
    %5 = arith.maximumf %3, %4 : vector<8x256xbf16>
    %c0_4 = arith.constant 0 : index
    %c0_5 = arith.constant 0 : index
    %6 = vector.load %arg3[%c0_4, %c0_5] : memref<256x32xbf16, #tpu.memory_space<vmem>>, vector<256x32xbf16>
    %cst_6 = arith.constant dense<0.000000e+00> : vector<8x32xf32>
    %7 = tpu.matmul %5, %6, %cst_6 {dimension_numbers = #tpu.dot_dimension_numbers<[1], [0], [0], [1], [0, 0, 1, 1], [], []>} : vector<8x256xbf16>, vector<256x32xbf16>, vector<8x32xf32> -> vector<8x32xf32>
    %c0_7 = arith.constant 0 : index
    %c0_8 = arith.constant 0 : index
    %8 = vector.load %arg4[%c0_7, %c0_8] : memref<1x32xf32, #tpu.memory_space<vmem>>, vector<1x32xf32>
    %9 = vector.broadcast %8 : vector<1x32xf32> to vector<8x32xf32>
    %10 = arith.addf %7, %9 : vector<8x32xf32>
    %c0_9 = arith.constant 0 : index
    %c0_10 = arith.constant 0 : index
    %11 = vector.load %arg5[%c0_9, %c0_10] : memref<8x32xf32, #tpu.memory_space<vmem>>, vector<8x32xf32>
    tpu.vector_store %arg5[%c0_9, %c0_10], %10 {strides = array<i32>} : memref<8x32xf32, #tpu.memory_space<vmem>>, vector<8x32xf32>,
    return
  }
  func.func @transform_0(%arg0: i32) -> (i32, i32) {
    %c0_i32 = arith.constant 0 : i32
    %c0_i32_0 = arith.constant 0 : i32
    return %arg0, %c0_i32 : i32, i32
  }
  func.func @transform_1(%arg0: i32) -> (i32, i32) {
    %c0_i32 = arith.constant 0 : i32
    %c0_i32_0 = arith.constant 0 : i32
    %c0_i32_1 = arith.constant 0 : i32
    return %c0_i32, %c0_i32_0 : i32, i32
  }
  func.func @transform_2(%arg0: i32) -> (i32, i32) {
    %c0_i32 = arith.constant 0 : i32
    %c0_i32_0 = arith.constant 0 : i32
    %c0_i32_1 = arith.constant 0 : i32
    return %c0_i32, %c0_i32_0 : i32, i32
  }
  func.func @transform_3(%arg0: i32) -> (i32, i32) {
    %c0_i32 = arith.constant 0 : i32
    %c0_i32_0 = arith.constant 0 : i32
    %c0_i32_1 = arith.constant 0 : i32
    return %c0_i32, %c0_i32_0 : i32, i32
  }
  func.func @transform_4(%arg0: i32) -> (i32, i32) {
    %c0_i32 = arith.constant 0 : i32
    %c0_i32_0 = arith.constant 0 : i32
    return %arg0, %c0_i32 : i32, i32
  }
}

</mosaic_0001>

<bundles_post_ra>
// kernel: tpu_custom_call.1
= control target key start
LH: loop header
LB: loop body
LE: loop exit
PB: predicated region body
PF: predicated region fallthrough
CT: control target
= control target key end

     0   :  { %vm54_vm0 = vcmask 1040384   ;;  %v392_v4 = vmov 0   ;;  %vm50_vm1 = vcmask 277504   ;;  %s491_s0 = inlined_call_operand.vmem [shape: bf16[8,34], index: 0, kind: input, shape index: {}]   ;;  %s492_s1 = inlined_call_operand.vmem [shape: bf16[34,256], index: 1, kind: input, shape index: {}]   ;;  %s493_s2 = inlined_call_operand.vmem [shape: bf16[256,32], index: 2, kind: input, shape index: {}]   ;;  %s494_s3 = inlined_call_operand.vmem [shape: f32[1,32], index: 3, kind: input, shape index: {}]   ;;  %s495_s4 = inlined_call_operand.hbm [shape: f32[8,32], index: 4, kind: output, shape index: {}]  }
   0x1   :  { %v24_v0 = vld [vmem:[%s492_s1 + $0x20] sm:$0x11]  ;;  %v348_v3 = vld [vmem:[%s492_s1 + $0x14] ss:$8 sps:$4 sm:$0xff]   ;;  %93 = vmatprep.mubr.bf16.mxu0 %v392_v4  ;;  %v350_v5 = vld [vmem:[%s492_s1 + $0x10] ss:$8 sps:$4 sm:$0xff]  }
   0x2   :  { %v302_v1 = vcombine.high %v24_v0, %v24_v0  ;;  %v301_v2 = vcombine.low %v24_v0, %v24_v0  ;;  %v351_v7 = vld [vmem:[%s492_s1 + $0x4] ss:$8 sps:$4 sm:$0xff]   ;;  %v354_v8 = vld [vmem:[%s493_s2 + $0x78] sm:$0xff]   ;;  %v353_v10 = vld [vmem:[%s492_s1] ss:$8 sps:$4 sm:$0xff]  }
   0x3   :  { %322 = vmatprep.subr.bf16.mxu1 %v354_v8  ;;  %v355_v9 = vld [vmem:[%s493_s2 + $0x38] sm:$0xff]   ;;  %v356_v11 = vld [vmem:[%s493_s2 + $0x70] sm:$0xff]   ;;  %v358_v13 = vld [vmem:[%s493_s2 + $0x68] sm:$0xff]  }
   0x4   :  { %303 = vmatprep.subr.msk.bf16.mxu0 %vm54_vm0, %v302_v1  ;;  %v56_v6 = vsel %vm54_vm0, %v301_v2, 0  ;;  %323 = vmatpush3.bf16.msra.mxu1 %v355_v9  ;;  %v357_v12 = vld [vmem:[%s493_s2 + $0x30] sm:$0xff]   ;;  %v19_v14 = vld [vmem:[%s491_s0] sm:$0xf]  ;;  %v359_v15 = vld [vmem:[%s493_s2 + $0x28] sm:$0xff]  }
   0x5   :  { %72 = vmatpush1.bf16.msra.mxu0 %v56_v6  ;;  %324 = vmatprep.subr.bf16.mxu1 %v356_v11  ;;  %v360_v16 = vld [vmem:[%s493_s2 + $0x60] sm:$0xff]   ;;  %v362_v18 = vld [vmem:[%s493_s2 + $0x58] sm:$0xff]  }
   0x6   :  { %73 = vmatprep.subr.bf16.mxu0 %v348_v3  ;;  %v361_v17 = vld [vmem:[%s493_s2 + $0x20] sm:$0xff]  }
   0x8   :  { %325 = vmatpush3.bf16.msra.mxu1 %v357_v12 }
   0x9   :  { %74 = vmatpush1.bf16.msra.mxu0 %v350_v5  ;;  %326 = vmatprep.subr.bf16.mxu1 %v358_v13 }
   0xa   :  { %75 = vmatprep.subr.bf16.mxu0 %v351_v7 }
   0xc   :  { %327 = vmatpush3.bf16.msra.mxu1 %v359_v15 }
   0xd   :  { %76 = vmatpush1.bf16.msra.mxu0 %v353_v10  ;;  %328 = vmatprep.subr.bf16.mxu1 %v360_v16 }
  0x10   :  { %304 = vmatmul.mubr.msk.bf16.vlgmr.msra.gmra.mxu0 %vm50_vm1, %v19_v14 }
  0x11   :  { %9 = vsyncpa [#allocation3], 0  ;;  %329 = vmatpush3.bf16.msra.mxu1 %v361_v17  ;;  %v363_v19 = vld [vmem:[%s493_s2 + $0x18] sm:$0xff]   ;;  %v364_v20 = vld [vmem:[%s493_s2 + $0x50] sm:$0xff]   ;;  %s393_s7 = smov [#allocation2]   ;;  %vm281_vm2 = vcmask 261120  }
  0x12   :  { %330 = vmatprep.subr.bf16.mxu1 %v362_v18  ;;  %v365_v21 = vld [vmem:[%s493_s2 + $0x10] sm:$0xff]   ;;  %v366_v22 = vld [vmem:[%s493_s2 + $0x48] sm:$0xff]   ;;  %v368_v24 = vld [vmem:[%s493_s2 + $0x40] sm:$0xff]  }
  0x13   :  { %v367_v23 = vld [vmem:[%s493_s2 + $0x8] sm:$0xff]   ;;  %v369_v25 = vld [vmem:[%s493_s2] sm:$0xff]   ;;  %s289_s2 = sshll.u32 %s393_s7, 4  ;;  %s290_s2 = int_to_ptr.vmem [resolvable:$true] %s289_s2 }
  0x14   :  { %v305_v35 = vld [vmem:[%s494_s3] ss:$0 sm:$0xff]  ;;  %s370_s8 = scalar_lea.vmem %s290_s2, 128  ;;  %p375_p1 = scmp.lt.s32.totalorder %s290_s2, %s290_s2 }
  0x15   :  { %331 = vmatpush3.bf16.msra.mxu1 %v363_v19  ;;  %p371_p0 = scmp.ne.s32.totalorder %s290_s2, %s370_s8  ;;  %p376_p2 = scmp.lt.s32.totalorder %s370_s8, %s370_s8 }
  0x16   :  { %332 = vmatprep.subr.bf16.mxu1 %v364_v20 }
  0x17   :  { %p377_p3 = por %p376_p2, %p375_p1 }
  0x19   :  { %333 = vmatpush3.bf16.msra.mxu1 %v365_v21  ;;  %p378_p4 = pnand %p377_p3, %p371_p0 }
  0x1a   :  { %334 = vmatprep.subr.bf16.mxu1 %v366_v22 }
  0x1d   :  { %335 = vmatpush3.bf16.msra.mxu1 %v367_v23 }
  0x1e   :  { %336 = vmatprep.subr.bf16.mxu1 %v368_v24 }
  0x21   :  { %337 = vmatpush3.bf16.msra.mxu1 %v369_v25 }
  0xd0   :  { %v95_v26 = vpop.f32.mrf.mxu0 }
  0xd1   :  { %v102_v27 = vpack.c.bf16 %v95_v26, %v95_v26 }
  0xd2   :  { %v97_v28 = vpop.f32.mrf.mxu0 }
  0xd3   :  { %v103_v29 = vpack.c.bf16 %v97_v28, %v97_v28  ;;  %v104_v32 = vmax.bf16 %v392_v4, %v102_v27 }
  0xd4   :  { %v99_v30 = vpop.f32.mrf.mxu0 }
  0xd5   :  { %v105_v31 = vmax.bf16 %v392_v4, %v103_v29 }
  0xd6   :  { %v100_v33 = vpop.f32.mrf.mxu0 }
  0xd7   :  { %273 = vmatprep.mubr.bf16.mxu1 %v105_v31 }
  0xd8   :  { %274 = vmatmul.mubr.bf16.vlgmr.msra.gmra.mxu1 %v104_v32 }
 0x198   :  { %v338_v34 = vpop.f32.mrf.mxu1 }
 0x19a   :  { %v339_v36 = vpop.f32.mrf.mxu1 }
 0x19b   :  { %v340_v37 = vadd.f32 %v339_v36, %v338_v34 }
 0x19c   :  { %v341_v38 = vpop.f32.mrf.mxu1 }
 0x19d   :  { %v276_v39 = vadd.f32 %v340_v37, %v305_v35 }
 0x19e   :  { %v342_v40 = vpop.f32.mrf.mxu1 }
 0x19f   :  { %282 = vst.msk [vmem:[#allocation2] sm:$0xff] %vm281_vm2, %v276_v39 }
 0x1a0   :  { %381 = shalt.err (!%p378_p4)
}
 0x1a1   :  { %292 = dma.vmem_to_hbm [thread:$0]  %s290_s2, 128, %s495_s4, [#allocation3]  }
 0x1a2   :  { %390 = dma.done.wait [#allocation3], 128  }
 0x1a3   :  { %391 = vsyncadd [#allocation3], 4294967168 }
 0x1a4   :  { %296 = vsyncpa [#allocation3], 1 }

</bundles_post_ra>
